<compile_context>
chip_gen: v7x
topology: tpu7x:2x2x1
jax: 0.10.0
libtpu: 0.0.40
codegen_flags: <defaults>
</compile_context>

<pallas_src>
import math
import functools

import jax
import jax.numpy as jnp
from jax import lax
from jax.experimental import pallas as pl
from jax.experimental.pallas import tpu as pltpu


def make_pe_table(max_len: int, d_model: int) -> jnp.ndarray:
    """Deterministic sinusoidal positional-encoding table, shape [max_len, d_model] (f32)."""
    position = jnp.arange(max_len, dtype=jnp.float32)[:, None]                  # (L, 1)
    div_term = jnp.exp(
        jnp.arange(0, d_model, 2, dtype=jnp.float32) * (-math.log(10000.0) / d_model)
    )                                                                           # (D/2,)
    pe = jnp.zeros((max_len, d_model), dtype=jnp.float32)
    pe = pe.at[:, 0::2].set(jnp.sin(position * div_term))
    pe = pe.at[:, 1::2].set(jnp.cos(position * div_term))
    return pe


def _pe_dropout_kernel(seed_ref, x_ref, pe_ref, o_ref, *,
                       p: float, apply_dropout: bool,
                       tb: int, tl: int, total_cols: int):
    # x_ref: (tb, tl) tile of the flattened [B, S*D] input; pe_ref: (1, tl) PE row.
    x = x_ref[...]
    pe = pe_ref[...]
    y = x + pe                                   # sublane broadcast of PE over batch rows

    if apply_dropout and p > 0.0:
        # Stateless counter-based PRNG: hash(global element index ^ seed).
        # Unique per element regardless of tiling / megacore sharding.
        i = pl.program_id(0)
        j = pl.program_id(1)
        rows = lax.broadcasted_iota(jnp.int32, (tb, tl), 0) + i * tb
        cols = lax.broadcasted_iota(jnp.int32, (tb, tl), 1) + j * tl
        idx = rows.astype(jnp.uint32) * jnp.uint32(total_cols) + cols.astype(jnp.uint32)
        z = idx + seed_ref[0].astype(jnp.uint32) * jnp.uint32(0x9E3779B9)
        # lowbias32 integer finalizer (good avalanche, pure VPU int ops)
        z = z ^ (z >> 16)
        z = z * jnp.uint32(0x7FEB352D)
        z = z ^ (z >> 15)
        z = z * jnp.uint32(0x846CA68B)
        z = z ^ (z >> 16)
        # integer-space keep decision (no int->float convert / float compare)
        r24 = (z >> 8).astype(jnp.int32)                  # uniform in [0, 2^24)
        threshold = int(round(p * (1 << 24)))
        keep = r24 >= threshold                           # P(keep) = 1 - p
        scale = jnp.asarray(1.0 / (1.0 - p), dtype=y.dtype)
        y = jnp.where(keep, y * scale, jnp.zeros_like(y))

    o_ref[...] = y.astype(o_ref.dtype)


def _choose_tiles(B: int, L: int, itemsize: int):
    """Pick (8,128)-friendly tiles ~<=2 MiB/block (safe for v7x's smaller VMEM)."""
    if L % 128 == 0:
        tl = min(L, 2048)                                 # lane-dense, unmasked stores
    else:
        tl = L                                            # full-dim fallback (legal block)
    if B % 8 == 0:
        tb = max(8, ((2 * 1024 * 1024) // (tl * itemsize)) // 8 * 8)
        tb = min(B, tb)
    else:
        tb = B                                            # full-dim fallback (legal block)
    return tb, tl


def positional_encoding(x, pe_table, *, p: float = 0.1, training: bool = True, seed: int = 0):
    """x: [S, B, D] -> [S, B, D]  (x + pe[:S] broadcast over batch, then dropout)."""
    S, B, D = x.shape
    L = S * D
    # Layout plumbing (wrapper-side): [S,B,D] -> [B, S*D] lane-dense view.
    x2 = jnp.transpose(x, (1, 0, 2)).reshape(B, L)
    pe2 = pe_table[:S].reshape(1, L).astype(x.dtype)      # PE stored/DMA'd in x.dtype
    seed_arr = jnp.asarray([seed], dtype=jnp.int32)

    tb, tl = _choose_tiles(B, L, jnp.dtype(x.dtype).itemsize)
    grid = (pl.cdiv(B, tb), pl.cdiv(L, tl))

    kernel = functools.partial(
        _pe_dropout_kernel, p=float(p), apply_dropout=bool(training),
        tb=tb, tl=tl, total_cols=L)

    out2 = pl.pallas_call(
        kernel,
        out_shape=jax.ShapeDtypeStruct((B, L), x.dtype),
        grid_spec=pltpu.PrefetchScalarGridSpec(
            num_scalar_prefetch=1,                        # seed -> SMEM
            grid=grid,
            in_specs=[
                pl.BlockSpec((tb, tl), lambda i, j, seed: (i, j)),   # x tile
                pl.BlockSpec((1, tl), lambda i, j, seed: (0, j)),    # pe row (reused over batch)
            ],
            out_specs=pl.BlockSpec((tb, tl), lambda i, j, seed: (i, j)),
        ),
        compiler_params=pltpu.CompilerParams(
            dimension_semantics=("parallel", "parallel")),            # no reduction axis
    )(seed_arr, x2, pe2)

    return out2.reshape(B, S, D).transpose(1, 0, 2)


if __name__ == "__main__":
    S, B, D = 8, 2, 32       # seq_len, batch, d_model
    MAX_LEN = 64
    P_DROP = 0.1

    key = jax.random.PRNGKey(0)
    x = jax.random.normal(key, (S, B, D), dtype=jnp.float32)
    pe_table = make_pe_table(MAX_LEN, D)
    ref_eval = x + pe_table[:S][:, None, :]

    # Eval mode (dropout = identity): exact semantics of x + pe[:S] broadcast over batch.
    out_eval = jax.block_until_ready(
        positional_encoding(x, pe_table, p=P_DROP, training=False))
    assert out_eval.shape == (S, B, D)
    assert jnp.allclose(out_eval, ref_eval, atol=1e-6), "eval-mode mismatch"

    # Training mode: in-kernel dropout mask, scaled by 1/(1-p).
    out_train = jax.block_until_ready(
        positional_encoding(x, pe_table, p=P_DROP, training=True, seed=1234))
    assert out_train.shape == (S, B, D)
    kept = out_train != 0.0
    assert jnp.allclose(
        jnp.where(kept, out_train, 0.0),
        jnp.where(kept, ref_eval / (1.0 - P_DROP), 0.0),
        atol=1e-5,
    ), "training-mode dropout scaling mismatch"
    # Rough sanity on drop rate.
    drop_frac = 1.0 - jnp.mean(kept.astype(jnp.float32))
    assert 0.0 < float(drop_frac) < 0.35, "dropout rate implausible"

    print("KERNEL_OK")
</pallas_src>

<mosaic_0001>
module attributes {stable_mosaic.version = 11 : i64} {
  func.func @_pe_dropout_kernel(%arg0: i32, %arg1: i32, %arg2: memref<1xi32, #tpu.memory_space<smem>>, %arg3: memref<2x256xf32, #tpu.memory_space<vmem>>, %arg4: memref<1x256xf32, #tpu.memory_space<vmem>>, %arg5: memref<2x256xf32, #tpu.memory_space<vmem>>) attributes {dimension_semantics = [#tpu.dimension_semantics<parallel>, #tpu.dimension_semantics<parallel>], iteration_bounds = array<i64: 1, 1>, scalar_prefetch = 1 : i64, scratch_operands = 0 : i64, tpu.core_type = #tpu.core_type<tc>, window_params = [{transform_indices = @transform_0, window_bounds = array<i64: 2, 256>}, {transform_indices = @transform_1, window_bounds = array<i64: 1, 256>}, {transform_indices = @transform_2, window_bounds = array<i64: 2, 256>}]} {
    %c0 = arith.constant 0 : index
    %c0_0 = arith.constant 0 : index
    %0 = vector.load %arg3[%c0, %c0_0] : memref<2x256xf32, #tpu.memory_space<vmem>>, vector<2x256xf32>
    %c0_1 = arith.constant 0 : index
    %c0_2 = arith.constant 0 : index
    %1 = vector.load %arg4[%c0_1, %c0_2] : memref<1x256xf32, #tpu.memory_space<vmem>>, vector<1x256xf32>
    %2 = vector.broadcast %1 : vector<1x256xf32> to vector<2x256xf32>
    %3 = arith.addf %0, %2 : vector<2x256xf32>
    %c0_3 = arith.constant 0 : index
    %c0_4 = arith.constant 0 : index
    %4 = vector.load %arg5[%c0_3, %c0_4] : memref<2x256xf32, #tpu.memory_space<vmem>>, vector<2x256xf32>
    tpu.vector_store %arg5[%c0_3, %c0_4], %3 {strides = array<i32>} : memref<2x256xf32, #tpu.memory_space<vmem>>, vector<2x256xf32>,
    return
  }
  func.func @transform_0(%arg0: i32, %arg1: i32, %arg2: memref<1xi32, #tpu.memory_space<smem>>) -> (i32, i32) {
    %c0_i32 = arith.constant 0 : i32
    return %arg0, %arg1 : i32, i32
  }
  func.func @transform_1(%arg0: i32, %arg1: i32, %arg2: memref<1xi32, #tpu.memory_space<smem>>) -> (i32, i32) {
    %c0_i32 = arith.constant 0 : i32
    %c0_i32_0 = arith.constant 0 : i32
    return %c0_i32, %arg1 : i32, i32
  }
  func.func @transform_2(%arg0: i32, %arg1: i32, %arg2: memref<1xi32, #tpu.memory_space<smem>>) -> (i32, i32) {
    %c0_i32 = arith.constant 0 : i32
    return %arg0, %arg1 : i32, i32
  }
}

</mosaic_0001>

<bundles_post_ra>
// kernel: tpu_custom_call.1
= control target key start
LH: loop header
LB: loop body
LE: loop exit
PB: predicated region body
PF: predicated region fallthrough
CT: control target
= control target key end

     0   :  { %9 = vsyncpa [#allocation5], 0  ;;  %s164_s0 = inlined_call_operand.<no memory space> [shape: s32[1], index: 0, kind: input, shape index: {}]   ;;  %s165_s1 = inlined_call_operand.hbm [shape: f32[2,256], index: 1, kind: input, shape index: {}]   ;;  %s166_s2 = inlined_call_operand.vmem [shape: f32[1,256], index: 2, kind: input, shape index: {}]   ;;  %s167_s3 = inlined_call_operand.hbm [shape: f32[2,256], index: 3, kind: output, shape index: {}]  }
   0x1   :  { %10 = vsyncpa [#allocation6], 0  ;;  %s114_s12 = smov [#allocation4]   ;;  %s66_s16 = scalar_lea.hbm %s165_s1, 64 }
   0x2   :  { %s17_s13 = sshll.u32 %s114_s12, 4  ;;  %p67_p0 = scmp.ne.s32.totalorder %s165_s1, %s66_s16  ;;  %s18_s13 = int_to_ptr.vmem [resolvable:$true] %s17_s13 }
   0x3   :  { %p70_p1 = scmp.lt.u32.totalorder %s66_s16, %s165_s1 }
   0x5   :  { %p72_p2 = pnand %p70_p1, %p67_p0 }
   0x7   :  { %75 = shalt.err (!%p72_p2)
}
   0x8   :  { %s76_s20 = scalar_lea.vmem %s18_s13, 64  ;;  %p81_p4 = scmp.lt.s32.totalorder %s18_s13, %s18_s13 }
   0x9   :  { %p77_p3 = scmp.ne.s32.totalorder %s18_s13, %s76_s20  ;;  %p82_p5 = scmp.lt.s32.totalorder %s76_s20, %s76_s20 }
   0xb   :  { %p83_p6 = por %p82_p5, %p81_p4 }
   0xd   :  { %p84_p7 = pnand %p83_p6, %p77_p3 }
   0xf   :  { %87 = shalt.err (!%p84_p7)
}
  0x10   :  { %20 = dma.hbm_to_vmem [thread:$0]  %s165_s1, 64, %s18_s13, [#allocation5]  }
  0x11   :  { %110 = dma.done.wait [#allocation5], 64  }
  0x12   :  { %111 = vsyncadd [#allocation5], 4294967232  ;;  %v29_v0 = vlaneseq  ;;  %v115_v1 = vmov 1983009808   ;;  %v27_v7 = vld [vmem:[%s166_s2] sm:$0x3] }
  0x13   :  { %v39_v2 = vunpack.c.l.s4 %v115_v1  ;;  %v26_v12 = vld [vmem:[#allocation4] sm:$0xf]  ;;  %s116_s25 = smov [#allocation7]  }
  0x14   :  { %v30_v3 = vshrl.u32 %v29_v0, 7  ;;  %s54_s1 = sshll.u32 %s116_s25, 4  ;;  %s55_s1 = int_to_ptr.vmem [resolvable:$true] %s54_s1 }
  0x15   :  { %v40_v6 = vunpack.c.0.s8 %v39_v2  ;;  %s88_s26 = scalar_lea.vmem %s55_s1, 64  ;;  %p93_p9 = scmp.lt.s32.totalorder %s55_s1, %s55_s1 }
  0x16   :  { %v31_v4 = vsub.s32 0, %v30_v3  ;;  %v35_v5 = vsub.s32 1, %v30_v3  ;;  %p89_p8 = scmp.ne.s32.totalorder %s55_s1, %s88_s26  ;;  %p94_p10 = scmp.lt.s32.totalorder %s88_s26, %s88_s26 }
  0x17   :  { %v43_v10 = vsub.s32 %v40_v6, %v30_v3 }
  0x18   :  { %v32_v8 = vrot.slane %v27_v7, %v31_v4  ;;  %v36_v9 = vrot.slane %v27_v7, %v35_v5  ;;  %p95_p11 = por %p94_p10, %p93_p9 }
  0x1a   :  { %v37_v11 = vcombine.low %v32_v8, %v36_v9  ;;  %p96_p12 = pnand %p95_p11, %p89_p8 }
  0x1c   :  { %v44_v13 = vrot.slane %v37_v11, %v43_v10 }
  0x1e   :  { %v46_v14 = vadd.f32 %v44_v13, %v26_v12 }
  0x20   :  { %47 = vst [vmem:[#allocation7] sm:$0xf] %v46_v14 }
  0x21   :  { %99 = shalt.err (!%p96_p12)
}
  0x22   :  { %s100_s28 = scalar_lea.hbm %s167_s3, 64 }
  0x23   :  { %p101_p13 = scmp.ne.s32.totalorder %s167_s3, %s100_s28  ;;  %p104_p0 = scmp.lt.u32.totalorder %s100_s28, %s167_s3 }
  0x25   :  { %p106_p1 = pnand %p104_p0, %p101_p13 }
  0x27   :  { %109 = shalt.err (!%p106_p1)
}
  0x28   :  { %57 = dma.vmem_to_hbm [thread:$0]  %s55_s1, 64, %s167_s3, [#allocation6]  }
  0x29   :  { %112 = dma.done.wait [#allocation6], 64  }
  0x2a   :  { %113 = vsyncadd [#allocation6], 4294967232 }
  0x2b   :  { %61 = vsyncpa [#allocation5], 1 }
  0x2c   :  { %62 = vsyncpa [#allocation6], 1 }

</bundles_post_ra>
